<compile_context>
chip_gen: v6e
topology: v6e:2x2x1
jax: 0.10.0
libtpu: 0.0.40
codegen_flags: <defaults>
</compile_context>

<pallas_src>
import jax
import jax.numpy as jnp
import numpy as np
from jax.experimental import pallas as pl
from jax.experimental.pallas import tpu as pltpu


def _discriminator_kernel(bias_ref, wc_ref, h_pl_ref, h_mi_ref, sc1_ref, sc2_ref):
    """One N-tile of the discriminator score.

    bias_ref : SMEM (1,)        bilinear bias (scalar)
    wc_ref   : VMEM (B, H)      precomputed W @ c[b]  (resident across grid steps)
    h_*_ref  : VMEM (B, TN, H)  streamed node embeddings (pipelined over N)
    sc*_ref  : VMEM (B, TN)     per-node scores (lane-dense outputs)
    """
    bias = bias_ref[0]
    wc = wc_ref[...].astype(jnp.float32)[:, None, :]      # (B, 1, H)

    h_pl = h_pl_ref[...].astype(jnp.float32)               # (B, TN, H)
    h_mi = h_mi_ref[...].astype(jnp.float32)               # (B, TN, H)

    # Pure streaming work: VPU elementwise multiply + XLU lane reduction over H.
    sc1_ref[...] = jnp.sum(h_pl * wc, axis=-1) + bias      # (B, TN)
    sc2_ref[...] = jnp.sum(h_mi * wc, axis=-1) + bias      # (B, TN)


def _pick_tile_n(B, N, H, itemsize, vmem_budget_bytes=12 * 1024 * 1024):
    """Largest node-tile such that 2 streamed inputs x 2 pipeline buffers fit
    the budget.  Multiples of 128 keep the (B, TN) outputs lane-dense and the
    (B, TN, H) input blocks sublane-aligned; otherwise fall back to full N."""
    per_row_bytes = 4 * B * H * itemsize          # 2 inputs x 2 buffers x one N-row
    tn = (vmem_budget_bytes // max(per_row_bytes, 1)) // 128 * 128
    tn = min(max(tn, 128), 2048)
    return N if tn >= N else tn


def discriminator_forward(c, h_pl, h_mi, w, bias, s_bias1=None, s_bias2=None,
                          tile_n=None):
    """Pallas equivalent of Discriminator.forward.

    c:    (B, H)            summary vectors
    h_pl: (B, N, H)         positive node embeddings (f32 or bf16)
    h_mi: (B, N, H)         negative node embeddings (f32 or bf16)
    w:    (H, H)            bilinear weight (out_features=1 squeezed)
    bias: (1,) or (1, 1)    bilinear bias
    Returns logits of shape (B, 2*N), f32.
    """
    B, N, H = h_pl.shape
    assert c.shape == (B, H) and h_mi.shape == (B, N, H) and w.shape == (H, H)

    # Hoisted out of the streamed kernel: wc[b, i] = sum_j W[i, j] * c[b, j].
    # dot_general contracts c's dim 1 with W's dim 1 -> no transpose materialized.
    wc = jax.lax.dot_general(
        c.astype(jnp.float32), w.astype(jnp.float32),
        dimension_numbers=(((1,), (1,)), ((), ())),
        precision=jax.lax.Precision.HIGHEST,
        preferred_element_type=jnp.float32)                 # (B, H)

    bias_s = jnp.reshape(bias, (-1,))[:1].astype(jnp.float32)  # (1,) scalar in SMEM

    itemsize = jnp.dtype(h_pl.dtype).itemsize
    tn = tile_n if tile_n is not None else _pick_tile_n(B, N, H, itemsize)
    grid = (pl.cdiv(N, tn),)

    # Advisory cost hint: mul + add per element for both streams; traffic is
    # dominated by the two (B, N, H) reads.
    cost = pl.CostEstimate(
        flops=4 * B * N * H,
        transcendentals=0,
        bytes_accessed=2 * B * N * H * itemsize + B * H * 4 + 2 * B * N * 4,
    )

    sc1, sc2 = pl.pallas_call(
        _discriminator_kernel,
        out_shape=(jax.ShapeDtypeStruct((B, N), jnp.float32),
                   jax.ShapeDtypeStruct((B, N), jnp.float32)),
        grid=grid,
        in_specs=[
            pl.BlockSpec(memory_space=pltpu.MemorySpace.SMEM),   # bias scalar
            pl.BlockSpec((B, H), lambda n: (0, 0)),              # wc, resident
            pl.BlockSpec((B, tn, H), lambda n: (0, n, 0)),       # h_pl tile
            pl.BlockSpec((B, tn, H), lambda n: (0, n, 0)),       # h_mi tile
        ],
        out_specs=(
            pl.BlockSpec((B, tn), lambda n: (0, n)),             # sc_1 tile
            pl.BlockSpec((B, tn), lambda n: (0, n)),             # sc_2 tile
        ),
        compiler_params=pltpu.CompilerParams(
            dimension_semantics=("parallel",),   # v7x: shard N-tiles across TCs
            vmem_limit_bytes=32 * 1024 * 1024,
        ),
        cost_estimate=cost,
    )(bias_s, wc, h_pl, h_mi)

    # Optional additive score biases + concat (plain-JAX glue, matches torch).
    if s_bias1 is not None:
        sc1 = sc1 + s_bias1
    if s_bias2 is not None:
        sc2 = sc2 + s_bias2
    return jnp.concatenate([sc1, sc2], axis=1)


def init_discriminator_params(key, n_h):
    """Deterministic xavier_uniform init matching Discriminator.weights_init."""
    # torch weight shape is (1, n_h, n_h); fan_in = n_h*n_h, fan_out = 1*n_h
    fan_in = n_h * n_h
    fan_out = n_h
    bound = float(np.sqrt(6.0 / (fan_in + fan_out)))
    w = jax.random.uniform(key, (n_h, n_h), jnp.float32, minval=-bound, maxval=bound)
    bias = jnp.zeros((1,), jnp.float32)
    return w, bias


def _reference_forward(c, h_pl, h_mi, w, bias):
    """Pure-JAX reference (mirrors torch.nn.Bilinear math)."""
    hp = h_pl.astype(jnp.float32)
    hm = h_mi.astype(jnp.float32)
    wc = jnp.einsum("ij,bj->bi", w, c, precision=jax.lax.Precision.HIGHEST)
    sc1 = jnp.einsum("bnh,bh->bn", hp, wc,
                     precision=jax.lax.Precision.HIGHEST) + bias[0]
    sc2 = jnp.einsum("bnh,bh->bn", hm, wc,
                     precision=jax.lax.Precision.HIGHEST) + bias[0]
    return jnp.concatenate([sc1, sc2], axis=1)


if __name__ == "__main__":
    key = jax.random.PRNGKey(0)

    # ---- Test 1: small shapes, single tile (full-extent blocks) ----
    B, N, H = 2, 8, 32
    k_w, k_c, k_pl, k_mi = jax.random.split(key, 4)
    w, bias = init_discriminator_params(k_w, H)
    c = jax.random.normal(k_c, (B, H), jnp.float32)
    h_pl = jax.random.normal(k_pl, (B, N, H), jnp.float32)
    h_mi = jax.random.normal(k_mi, (B, N, H), jnp.float32)

    logits = jax.block_until_ready(discriminator_forward(c, h_pl, h_mi, w, bias))
    ref = _reference_forward(c, h_pl, h_mi, w, bias)
    np.testing.assert_allclose(np.asarray(logits), np.asarray(ref),
                               rtol=1e-5, atol=1e-5)
    assert logits.shape == (B, 2 * N)

    # ---- Test 2: tiled grid over N + bf16 streamed inputs ----
    B2, N2, H2 = 2, 384, 32
    k_w2, k_c2, k_pl2, k_mi2 = jax.random.split(jax.random.PRNGKey(1), 4)
    w2, bias2 = init_discriminator_params(k_w2, H2)
    c2 = jax.random.normal(k_c2, (B2, H2), jnp.float32)
    h_pl2 = jax.random.normal(k_pl2, (B2, N2, H2), jnp.float32).astype(jnp.bfloat16)
    h_mi2 = jax.random.normal(k_mi2, (B2, N2, H2), jnp.float32).astype(jnp.bfloat16)

    logits2 = jax.block_until_ready(
        discriminator_forward(c2, h_pl2, h_mi2, w2, bias2, tile_n=128))
    ref2 = _reference_forward(c2, h_pl2, h_mi2, w2, bias2)
    np.testing.assert_allclose(np.asarray(logits2), np.asarray(ref2),
                               rtol=1e-4, atol=1e-4)
    assert logits2.shape == (B2, 2 * N2)

    print("KERNEL_OK")
</pallas_src>

<mosaic_0001>
module attributes {stable_mosaic.version = 11 : i64} {
  func.func @_discriminator_kernel(%arg0: i32, %arg1: memref<1xf32, #tpu.memory_space<smem>>, %arg2: memref<2x32xf32, #tpu.memory_space<vmem>>, %arg3: memref<2x8x32xf32, #tpu.memory_space<vmem>>, %arg4: memref<2x8x32xf32, #tpu.memory_space<vmem>>, %arg5: memref<2x8xf32, #tpu.memory_space<vmem>>, %arg6: memref<2x8xf32, #tpu.memory_space<vmem>>) attributes {dimension_semantics = [#tpu.dimension_semantics<parallel>], iteration_bounds = array<i64: 1>, scalar_prefetch = 0 : i64, scratch_operands = 0 : i64, tpu.core_type = #tpu.core_type<tc>, window_params = [{transform_indices = @transform_0, window_bounds = array<i64: 1>}, {pipeline_mode = #tpu.pipeline_mode<synchronous>, transform_indices = @transform_1, window_bounds = array<i64: 2, 32>}, {transform_indices = @transform_2, window_bounds = array<i64: 2, 8, 32>}, {transform_indices = @transform_3, window_bounds = array<i64: 2, 8, 32>}, {transform_indices = @transform_4, window_bounds = array<i64: 2, 8>}, {transform_indices = @transform_5, window_bounds = array<i64: 2, 8>}]} {
    %c0 = arith.constant 0 : index
    %0 = memref.load %arg1[%c0] : memref<1xf32, #tpu.memory_space<smem>>
    %c0_0 = arith.constant 0 : index
    %c0_1 = arith.constant 0 : index
    %1 = vector.load %arg2[%c0_0, %c0_1] : memref<2x32xf32, #tpu.memory_space<vmem>>, vector<2x32xf32>
    %2 = vector.shape_cast %1 : vector<2x32xf32> to vector<2x1x32xf32>
    %c0_2 = arith.constant 0 : index
    %c0_3 = arith.constant 0 : index
    %c0_4 = arith.constant 0 : index
    %3 = vector.load %arg3[%c0_2, %c0_3, %c0_4] : memref<2x8x32xf32, #tpu.memory_space<vmem>>, vector<2x8x32xf32>
    %c0_5 = arith.constant 0 : index
    %c0_6 = arith.constant 0 : index
    %c0_7 = arith.constant 0 : index
    %4 = vector.load %arg4[%c0_5, %c0_6, %c0_7] : memref<2x8x32xf32, #tpu.memory_space<vmem>>, vector<2x8x32xf32>
    %5 = vector.broadcast %2 : vector<2x1x32xf32> to vector<2x8x32xf32>
    %6 = arith.mulf %3, %5 : vector<2x8x32xf32>
    %cst = arith.constant dense<0.000000e+00> : vector<2x8xf32>
    %7 = vector.multi_reduction <add>, %6, %cst [2] : vector<2x8x32xf32> to vector<2x8xf32>
    %8 = vector.broadcast %0 : f32 to vector<2x8xf32>
    %9 = arith.addf %7, %8 : vector<2x8xf32>
    %c0_8 = arith.constant 0 : index
    %c0_9 = arith.constant 0 : index
    %10 = vector.load %arg5[%c0_8, %c0_9] : memref<2x8xf32, #tpu.memory_space<vmem>>, vector<2x8xf32>
    tpu.vector_store %arg5[%c0_8, %c0_9], %9 {strides = array<i32>} : memref<2x8xf32, #tpu.memory_space<vmem>>, vector<2x8xf32>,
    %11 = vector.broadcast %2 : vector<2x1x32xf32> to vector<2x8x32xf32>
    %12 = arith.mulf %4, %11 : vector<2x8x32xf32>
    %cst_10 = arith.constant dense<0.000000e+00> : vector<2x8xf32>
    %13 = vector.multi_reduction <add>, %12, %cst_10 [2] : vector<2x8x32xf32> to vector<2x8xf32>
    %14 = vector.broadcast %0 : f32 to vector<2x8xf32>
    %15 = arith.addf %13, %14 : vector<2x8xf32>
    %c0_11 = arith.constant 0 : index
    %c0_12 = arith.constant 0 : index
    %16 = vector.load %arg6[%c0_11, %c0_12] : memref<2x8xf32, #tpu.memory_space<vmem>>, vector<2x8xf32>
    tpu.vector_store %arg6[%c0_11, %c0_12], %15 {strides = array<i32>} : memref<2x8xf32, #tpu.memory_space<vmem>>, vector<2x8xf32>,
    return
  }
  func.func @transform_0(%arg0: i32) -> i32 {
    %c0_i32 = arith.constant 0 : i32
    %c0_i32_0 = arith.constant 0 : i32
    return %c0_i32 : i32
  }
  func.func @transform_1(%arg0: i32) -> (i32, i32) {
    %c0_i32 = arith.constant 0 : i32
    %c0_i32_0 = arith.constant 0 : i32
    %c0_i32_1 = arith.constant 0 : i32
    return %c0_i32, %c0_i32_0 : i32, i32
  }
  func.func @transform_2(%arg0: i32) -> (i32, i32, i32) {
    %c0_i32 = arith.constant 0 : i32
    %c0_i32_0 = arith.constant 0 : i32
    %c0_i32_1 = arith.constant 0 : i32
    return %c0_i32, %arg0, %c0_i32_0 : i32, i32, i32
  }
  func.func @transform_3(%arg0: i32) -> (i32, i32, i32) {
    %c0_i32 = arith.constant 0 : i32
    %c0_i32_0 = arith.constant 0 : i32
    %c0_i32_1 = arith.constant 0 : i32
    return %c0_i32, %arg0, %c0_i32_0 : i32, i32, i32
  }
  func.func @transform_4(%arg0: i32) -> (i32, i32) {
    %c0_i32 = arith.constant 0 : i32
    %c0_i32_0 = arith.constant 0 : i32
    return %c0_i32, %arg0 : i32, i32
  }
  func.func @transform_5(%arg0: i32) -> (i32, i32) {
    %c0_i32 = arith.constant 0 : i32
    %c0_i32_0 = arith.constant 0 : i32
    return %c0_i32, %arg0 : i32, i32
  }
}

</mosaic_0001>

<bundles_post_ra>
// kernel: tpu_custom_call.1
= control target key start
LH: loop header
LB: loop body
LE: loop exit
PB: predicated region body
PF: predicated region fallthrough
CT: control target
= control target key end

     0   :  { %12 = vsyncpa [#allocation4], 0  ;;  %s322_s0 = inlined_call_operand.<no memory space> [shape: f32[1], index: 0, kind: input, shape index: {}]   ;;  %s323_s1 = inlined_call_operand.vmem [shape: f32[2,32], index: 1, kind: input, shape index: {}]   ;;  %s324_s2 = inlined_call_operand.hbm [shape: f32[2,8,32], index: 2, kind: input, shape index: {}]   ;;  %s325_s3 = inlined_call_operand.hbm [shape: f32[2,8,32], index: 3, kind: input, shape index: {}]   ;;  %s326_s4 = inlined_call_operand.hbm [shape: f32[2,8], index: 4, kind: output, shape index: {0}]   ;;  %s327_s5 = inlined_call_operand.hbm [shape: f32[2,8], index: 5, kind: output, shape index: {1}]  }
   0x1   :  { %13 = vsyncpa [#allocation7], 0 }
   0x2   :  { %14 = vsyncpa [#allocation5], 0 }
   0x3   :  { %15 = vsyncpa [#allocation10], 0  ;;  %s267_s18 = smov [#allocation3]  }
   0x4   :  { %s25_s19 = sshll.u32 %s267_s18, 4  ;;  %s26_s19 = int_to_ptr.vmem [resolvable:$true] %s25_s19 }
   0x5   :  { %s187_s20 = scalar_lea.vmem %s26_s19, 256  ;;  %p192_p1 = scmp.lt.s32.totalorder %s26_s19, %s26_s19 }
   0x6   :  { %p188_p0 = scmp.ne.s32.totalorder %s26_s19, %s187_s20  ;;  %p193_p2 = scmp.lt.s32.totalorder %s187_s20, %s187_s20 }
   0x8   :  { %p194_p3 = por %p193_p2, %p192_p1 }
   0xa   :  { %p195_p4 = pnand %p194_p3, %p188_p0 }
   0xc   :  { %198 = shalt.err (!%p195_p4)
}
   0xd   :  { %s268_s21 = smov 128   ;;  %s269_s22 = smov 8  }
   0xe   :  { %31 = dma.hbm_to_vmem [thread:$0]  %s324_s2, 256, %s26_s19, [#allocation4], %s268_s21, %s268_s21, %s269_s22  }
   0xf   :  { %s270_s25 = smov [#allocation6]  }
  0x10   :  { %s37_s26 = sshll.u32 %s270_s25, 4  ;;  %s38_s26 = int_to_ptr.vmem [resolvable:$true] %s37_s26 }
  0x11   :  { %s207_s27 = scalar_lea.vmem %s38_s26, 256  ;;  %p212_p6 = scmp.lt.s32.totalorder %s38_s26, %s38_s26 }
  0x12   :  { %p208_p5 = scmp.ne.s32.totalorder %s38_s26, %s207_s27  ;;  %p213_p7 = scmp.lt.s32.totalorder %s207_s27, %s207_s27 }
  0x14   :  { %p214_p8 = por %p213_p7, %p212_p6 }
  0x16   :  { %p215_p9 = pnand %p214_p8, %p208_p5 }
  0x18   :  { %218 = shalt.err (!%p215_p9)
}
  0x19   :  { %43 = dma.hbm_to_vmem [thread:$0]  %s325_s3, 256, %s38_s26, [#allocation7], %s268_s21, %s268_s21, %s269_s22  }
  0x1a   :  { %259 = dma.done.wait [#allocation4], 256  }
  0x1b   :  { %260 = vsyncadd [#allocation4], 4294967040 }
  0x1c   :  { %261 = dma.done.wait [#allocation7], 256  }
  0x1d   :  { %262 = vsyncadd [#allocation7], 4294967040  ;;  %v64_v0 = vlaneseq  ;;  %v271_v1 = vmov 1966171168   ;;  %v77_v12 = vld [vmem:[#allocation6] sm:$0xff]  ;;  %v75_v13 = vld [vmem:[#allocation3] sm:$0xff]  ;;  %v98_v27 = vstv %s322_s0 }
  0x1e   :  { %v62_v2 = vunpack.c.l.s4 %v271_v1  ;;  %v171_v9 = vld.sshfl [vmem:[%s323_s1] sm:$0x11 pattern:$0x75316420]  ;;  %vm91_vm0 = vcmask 261120   ;;  %v78_v16 = vld [vmem:[#allocation6 + $0x8] sm:$0xff] }
  0x1f   :  { %v65_v3 = vshrl.u32 %v64_v0, 7  ;;  %v104_v4 = vand.u32 127, %v64_v0  ;;  %v60_v11 = vcombine.high %v171_v9, %v171_v9  ;;  %v76_v17 = vld [vmem:[#allocation3 + $0x8] sm:$0xff]  ;;  %s272_s6 = smov [#allocation8]   ;;  %vm113_vm1 = vcmask 1041409   ;;  %s273_s8 = smov [#allocation9]  }
  0x20   :  { %v63_v5 = vunpack.c.0.s8 %v62_v2  ;;  %s147_s7 = sshll.u32 %s272_s6, 4  ;;  %vm116_vm2 = vcmask 58368   ;;  %s157_s9 = sshll.u32 %s273_s8, 4  ;;  %s148_s7 = int_to_ptr.vmem [resolvable:$true] %s147_s7  ;;  %s158_s9 = int_to_ptr.vmem [resolvable:$true] %s157_s9 }
  0x21   :  { %v107_v6 = vsub.s32 %v104_v4, %v65_v3  ;;  %v81_v8 = vsub.s32 0, %v65_v3  ;;  %s219_s0 = scalar_lea.vmem %s148_s7, 32  ;;  %p224_p11 = scmp.lt.s32.totalorder %s148_s7, %s148_s7 }
  0x22   :  { %v66_v7 = vsub.s32 %v63_v5, %v65_v3  ;;  %p220_p10 = scmp.ne.s32.totalorder %s148_s7, %s219_s0  ;;  %p225_p12 = scmp.lt.s32.totalorder %s219_s0, %s219_s0 }
  0x24   :  { %v67_v10 = vrot.slane %v171_v9, %v66_v7  ;;  %v74_v15 = vrot.slane %v60_v11, %v66_v7  ;;  %p226_p13 = por %p225_p12, %p224_p11 }
  0x26   :  { %v82_v14 = vrot.slane %v67_v10, %v81_v8  ;;  %v86_v20 = vrot.slane %v74_v15, %v81_v8  ;;  %p227_p0 = pnand %p226_p13, %p220_p10 }
  0x28   :  { %v118_v18 = vmul.f32 %v82_v14, %v77_v12  ;;  %v89_v19 = vmul.f32 %v82_v14, %v75_v13  ;;  %v119_v23 = vmul.f32 %v86_v20, %v78_v16  ;;  %v90_v24 = vmul.f32 %v86_v20, %v76_v17 }
  0x2a   :  { %v120_v21 = vsel %vm91_vm0, %v118_v18, 0.0  ;;  %v92_v22 = vsel %vm91_vm0, %v89_v19, 0.0  ;;  %v123_v25 = vsel %vm91_vm0, %v119_v23, 0.0  ;;  %v95_v26 = vsel %vm91_vm0, %v90_v24, 0.0 }
  0x2b   :  { %121 = vadd.xlane.f32.xlu1 %v120_v21  ;;  %93 = vadd.xlane.f32.xlu0 %v92_v22 }
  0x2f   :  { %124 = vadd.xlane.f32.xlu1 %v123_v25  ;;  %96 = vadd.xlane.f32.xlu0 %v95_v26 }
  0xb4   :  { %v122_v28 = vpop.xlane.xlu1 %121  ;;  %v94_v29 = vpop.xlane.xlu0 %93 }
  0xb5   :  { %v126_v30 = vadd.f32 %v122_v28, %v98_v27  ;;  %v99_v31 = vadd.f32 %v98_v27, %v94_v29 }
  0xb7   :  { %v133_v36 = vrot.slane %v126_v30, %v107_v6  ;;  %v108_v37 = vrot.slane %v99_v31, %v107_v6 }
  0xb8   :  { %v125_v32 = vpop.xlane.xlu1 %124  ;;  %v97_v33 = vpop.xlane.xlu0 %96 }
  0xb9   :  { %v127_v34 = vadd.f32 %v125_v32, %v98_v27  ;;  %v100_v35 = vadd.f32 %v98_v27, %v97_v33 }
  0xbb   :  { %v137_v38 = vrot.slane %v127_v34, %v107_v6  ;;  %v112_v39 = vrot.slane %v100_v35, %v107_v6 }
  0xbd   :  { %v114_v40 = vsel %vm113_vm1, %v112_v39, %v108_v37  ;;  %v138_v41 = vsel %vm113_vm1, %v137_v38, %v133_v36 }
  0xbe   :  { %117 = vst.msk [vmem:[#allocation8] sm:$0x3] %vm116_vm2, %v114_v40  ;;  %140 = vst.msk [vmem:[#allocation9] sm:$0x3] %vm116_vm2, %v138_v41 }
  0xbf   :  { %230 = shalt.err (!%p227_p0)
}
  0xc0   :  { %150 = dma.vmem_to_hbm [thread:$0]  %s148_s7, 32, %s326_s4, [#allocation5]  }
  0xc1   :  { %s239_s12 = scalar_lea.vmem %s158_s9, 32  ;;  %p244_p2 = scmp.lt.s32.totalorder %s158_s9, %s158_s9 }
  0xc2   :  { %p240_p1 = scmp.ne.s32.totalorder %s158_s9, %s239_s12  ;;  %p245_p3 = scmp.lt.s32.totalorder %s239_s12, %s239_s12 }
  0xc4   :  { %p246_p4 = por %p245_p3, %p244_p2 }
  0xc6   :  { %p247_p5 = pnand %p246_p4, %p240_p1 }
  0xc8   :  { %250 = shalt.err (!%p247_p5)
}
  0xc9   :  { %160 = dma.vmem_to_hbm [thread:$0]  %s158_s9, 32, %s327_s5, [#allocation10]  }
  0xca   :  { %263 = dma.done.wait [#allocation5], 32  }
  0xcb   :  { %264 = vsyncadd [#allocation5], 4294967264 }
  0xcc   :  { %265 = dma.done.wait [#allocation10], 32  }
  0xcd   :  { %266 = vsyncadd [#allocation10], 4294967264 }
  0xce   :  { %167 = vsyncpa [#allocation4], 1 }
  0xcf   :  { %168 = vsyncpa [#allocation7], 1 }
  0xd0   :  { %169 = vsyncpa [#allocation5], 1 }
  0xd1   :  { %170 = vsyncpa [#allocation10], 1 }

</bundles_post_ra>
